<compile_context>
chip_gen: v5e
topology: v5e:2x2
jax: 0.10.0
libtpu: 0.0.40
codegen_flags: <defaults>
</compile_context>

<pallas_src>
import functools

import jax
import jax.numpy as jnp
from jax import lax
from jax.experimental import pallas as pl
from jax.experimental.pallas import tpu as pltpu

# ---- GaussianNet configuration (baked in, mirrors the PyTorch ctor args) ------
MIN_STD = -5.0
MAX_STD = 2.0
ACTION_ACTIVATION = "tanh"   # '' | 'tanh' | 'sigmoid'
STD_TRANSFORM = "log"        # 'log' | 'softplus'
STD_INIT_BIAS = 0.0

LANE = 128
SUBLANE = 8


def _round_up(n, m):
    return (n + m - 1) // m * m


def _pad2d(a, rows, cols):
    return jnp.pad(a, ((0, rows - a.shape[0]), (0, cols - a.shape[1])))


# --------------------------------------------------------------------------------
# Kernel
# --------------------------------------------------------------------------------
def gaussian_net_kernel(x_ref, w1_ref, b1_ref, w2_ref, b2_ref, wh_ref, bh_ref,
                        out_ref, *, num_outputs):
    """Fused MLP(ReLU x2) -> fused [mu|std] head -> single-exp activations."""
    # In-kernel bf16 cast of x (saves the host pad/cast pass and 2-4x HBM read).
    x = x_ref[...].astype(w1_ref.dtype)                 # (TB, num_inputs) bf16

    # Layer 1: Linear + ReLU   (bf16 operands, f32 accumulation, f32 bias/act)
    h = jnp.dot(x, w1_ref[...], preferred_element_type=jnp.float32) + b1_ref[...]
    h = jnp.maximum(h, 0.0)

    # Layer 2: Linear + ReLU
    h = jnp.dot(h.astype(w2_ref.dtype), w2_ref[...],
                preferred_element_type=jnp.float32) + b2_ref[...]
    h = jnp.maximum(h, 0.0)

    # Fused [mu | std] head: one lane-dense matmul (head_pad = 128 lanes).
    head = jnp.dot(h.astype(wh_ref.dtype), wh_ref[...],
                   preferred_element_type=jnp.float32) + bh_ref[...]

    lane = lax.broadcasted_iota(jnp.int32, head.shape, dimension=1)
    is_mu = lane < num_outputs   # lanes [0,no): mu, [no,2no): std, rest: padding

    if ACTION_ACTIVATION == "tanh" and STD_TRANSFORM == "log":
        # Single EUP exp pass serving both branches:
        #   mu  = tanh(h)  = (e^{2h} - 1) / (e^{2h} + 1)
        #   std = exp(clip(h, MIN_STD, MAX_STD))
        # Clamp 2h above so e never overflows to inf (would give inf*0 = nan).
        y = jnp.where(is_mu,
                      jnp.minimum(2.0 * head, 30.0),
                      jnp.clip(head, MIN_STD, MAX_STD))
        e = jnp.exp(y)
        mu = (e - 1.0) * pl.reciprocal(e + 1.0, approx=True)
        out = jnp.where(is_mu, mu, e)
    else:
        # General (two-transcendental) fallback for other configurations.
        if ACTION_ACTIVATION == "tanh":
            mu = jnp.tanh(head)
        elif ACTION_ACTIVATION == "sigmoid":
            mu = jax.nn.sigmoid(head)
        else:
            mu = head
        std = jnp.clip(head, MIN_STD, MAX_STD)
        std = jnp.exp(std) if STD_TRANSFORM == "log" else jax.nn.softplus(std)
        out = jnp.where(is_mu, mu, std)

    out_ref[...] = out.astype(out_ref.dtype)


# --------------------------------------------------------------------------------
# Host-side param prep (fuse heads, pad output dims to lane width, cast to bf16)
# --------------------------------------------------------------------------------
def prepare_params(raw_params, compute_dtype=jnp.bfloat16):
    """raw (in,out)-layout f32 params -> head-fused kernel params.

    Only OUTPUT feature dims are padded to 128 lanes; w1's K dim stays at
    num_inputs so x can be passed at its natural width.
    """
    w1, b1, w2, b2, wmu, bmu, wstd, bstd = raw_params
    num_inputs, h1 = w1.shape
    h2 = w2.shape[1]
    num_outputs = wmu.shape[1]

    h1_pad = _round_up(h1, LANE)
    h2_pad = _round_up(h2, LANE)
    head_pad = _round_up(2 * num_outputs, LANE)

    w1p = _pad2d(w1, num_inputs, h1_pad).astype(compute_dtype)   # K unpadded
    b1p = _pad2d(b1, 1, h1_pad).astype(jnp.float32)
    w2p = _pad2d(w2, h1_pad, h2_pad).astype(compute_dtype)
    b2p = _pad2d(b2, 1, h2_pad).astype(jnp.float32)

    w_head = jnp.concatenate([wmu, wstd], axis=1)        # (h2, 2*num_outputs)
    b_head = jnp.concatenate([bmu, bstd], axis=1)        # (1,  2*num_outputs)
    whp = _pad2d(w_head, h2_pad, head_pad).astype(compute_dtype)
    bhp = _pad2d(b_head, 1, head_pad).astype(jnp.float32)

    dims = dict(num_inputs=num_inputs, num_outputs=num_outputs,
                h1_pad=h1_pad, h2_pad=h2_pad, head_pad=head_pad)
    return (w1p, b1p, w2p, b2p, whp, bhp), dims


# --------------------------------------------------------------------------------
# Wrapper
# --------------------------------------------------------------------------------
def gaussian_net_forward(x, kernel_params, dims, *, block_b=2048):
    w1, b1, w2, b2, wh, bh = kernel_params
    B, num_inputs = x.shape
    num_outputs = dims["num_outputs"]
    h1_pad, h2_pad, head_pad = dims["h1_pad"], dims["h2_pad"], dims["head_pad"]

    # Batch tile: large (amortizes ~0.35us/step overhead), always a multiple of
    # 8 sublanes.  Keep >= 2 grid steps when the batch permits so the
    # "parallel" grid axis can shard tiles across both TensorCores on v7x and
    # the pipeline has something to overlap; 2 large steps is also fine for
    # single-TC v5e/v6e.
    pb8 = _round_up(max(B, SUBLANE), SUBLANE)
    tb = _round_up(min(block_b, pb8), SUBLANE)
    if pb8 // tb < 2 and pb8 >= 2 * SUBLANE:
        tb = _round_up(pl.cdiv(pb8, 2), SUBLANE)
    pb = _round_up(pb8, tb)
    grid = (pb // tb,)

    # Row-only zero padding (cheap); x keeps its natural width and dtype — the
    # bf16 cast happens inside the kernel.  Padded rows give defined values
    # (mu=tanh(bias), std=exp(clip(bias))) and are sliced off below.
    if pb != B:
        x = jnp.pad(x, ((0, pb - B), (0, 0)))

    x_bytes = x.dtype.itemsize
    w_bytes = (num_inputs * h1_pad + h1_pad * h2_pad + h2_pad * head_pad) * 2
    flops = 2 * pb * (num_inputs * h1_pad + h1_pad * h2_pad + h2_pad * head_pad)
    transcendentals = 2 * pb * head_pad                  # exp + approx reciprocal
    bytes_accessed = (pb * num_inputs * x_bytes          # x read (natural width)
                      + w_bytes + (h1_pad + h2_pad + head_pad) * 4
                      + pb * head_pad * 2)               # bf16 output slab

    fused = pl.pallas_call(
        functools.partial(gaussian_net_kernel, num_outputs=num_outputs),
        out_shape=jax.ShapeDtypeStruct((pb, head_pad), jnp.bfloat16),
        grid=grid,
        in_specs=[
            pl.BlockSpec((tb, num_inputs), lambda i: (i, 0)),    # x: tiled over batch
            pl.BlockSpec((num_inputs, h1_pad), lambda i: (0, 0)),  # weights/biases:
            pl.BlockSpec((1, h1_pad), lambda i: (0, 0)),           # VMEM-resident
            pl.BlockSpec((h1_pad, h2_pad), lambda i: (0, 0)),      # across all steps
            pl.BlockSpec((1, h2_pad), lambda i: (0, 0)),
            pl.BlockSpec((h2_pad, head_pad), lambda i: (0, 0)),
            pl.BlockSpec((1, head_pad), lambda i: (0, 0)),
        ],
        out_specs=pl.BlockSpec((tb, head_pad), lambda i: (i, 0)),
        compiler_params=pltpu.CompilerParams(
            dimension_semantics=("parallel",)),                   # megacore on v7x
        cost_estimate=pl.CostEstimate(
            flops=int(flops),
            transcendentals=int(transcendentals),
            bytes_accessed=int(bytes_accessed)),
    )(x, w1, b1, w2, b2, wh, bh)

    # Single contiguous slice of the slab, then a cheap split of the tiny
    # (B, 2*no) result.  Ideally the consumer (CustomNormal sampling) would be
    # fused into the kernel so mu/std never round-trip HBM at all.
    head = fused[:B, :2 * num_outputs]
    return head[:, :num_outputs], head[:, num_outputs:]


# --------------------------------------------------------------------------------
# Init + references
# --------------------------------------------------------------------------------
def _orthogonal(key, shape, gain=1.0):
    """Deterministic orthogonal init (mimics nn.init.orthogonal_), stored (in, out)."""
    rows, cols = shape
    a = jax.random.normal(key, (max(rows, cols), min(rows, cols)), dtype=jnp.float32)
    q, r = jnp.linalg.qr(a)
    q = q * jnp.sign(jnp.diagonal(r))[None, :]
    if rows < cols:
        q = q.T
    return gain * q[:rows, :cols].astype(jnp.float32)


def init_params(key, num_inputs, hidden_sizes, num_outputs, std_init_bias):
    k1, k2, k3, k4 = jax.random.split(key, 4)
    h1, h2 = hidden_sizes
    w1 = _orthogonal(k1, (num_inputs, h1), gain=jnp.sqrt(2.0))
    b1 = jnp.zeros((1, h1), jnp.float32)
    w2 = _orthogonal(k2, (h1, h2), gain=jnp.sqrt(2.0))
    b2 = jnp.zeros((1, h2), jnp.float32)
    wmu = _orthogonal(k3, (h2, num_outputs), gain=0.01)
    bmu = jnp.zeros((1, num_outputs), jnp.float32)
    wstd = _orthogonal(k4, (h2, num_outputs), gain=0.01)
    bstd = jnp.full((1, num_outputs), std_init_bias, jnp.float32)
    return (w1, b1, w2, b2, wmu, bmu, wstd, bstd)


def reference_forward(x, raw_params, compute_dtype=None):
    """Pure-JAX reference. If compute_dtype is set, mirror the kernel's
    bf16-operand / f32-accumulate matmul recipe."""
    w1, b1, w2, b2, wmu, bmu, wstd, bstd = raw_params

    def dot(a, b):
        if compute_dtype is not None:
            a = a.astype(compute_dtype)
            b = b.astype(compute_dtype)
        return jnp.dot(a, b, preferred_element_type=jnp.float32)

    h = jnp.maximum(dot(x, w1) + b1, 0.0)
    h = jnp.maximum(dot(h, w2) + b2, 0.0)
    mu = jnp.tanh(dot(h, wmu) + bmu)
    std = jnp.exp(jnp.clip(dot(h, wstd) + bstd, MIN_STD, MAX_STD))
    return mu, std


# --------------------------------------------------------------------------------
if __name__ == "__main__":
    key = jax.random.PRNGKey(0)
    kx, kp = jax.random.split(key)

    B = 192                      # not a multiple of 8*k tiles -> exercises row padding
    num_inputs = 32
    hidden_sizes = (64, 64)
    num_outputs = 8

    x = jax.random.normal(kx, (B, num_inputs), dtype=jnp.float32)
    raw_params = init_params(kp, num_inputs, hidden_sizes, num_outputs, STD_INIT_BIAS)
    kernel_params, dims = prepare_params(raw_params, compute_dtype=jnp.bfloat16)

    # Default block_b=2048 at B=192 -> tb=96, grid=(2,): exercises the >=2-tile
    # megacore split and the pipelined batch grid.
    mu, std = gaussian_net_forward(x, kernel_params, dims)
    jax.block_until_ready((mu, std))
    mu = mu.astype(jnp.float32)
    std = std.astype(jnp.float32)

    # Check vs a reference using the same bf16-operand matmul recipe (kernel
    # additionally stores bf16 outputs and uses an approx reciprocal for tanh).
    mu_bf, std_bf = reference_forward(x, raw_params, compute_dtype=jnp.bfloat16)
    assert jnp.allclose(mu, mu_bf, atol=1e-2, rtol=1e-2), "mu mismatch (bf16 ref)"
    assert jnp.allclose(std, std_bf, atol=1e-2, rtol=1e-2), "std mismatch (bf16 ref)"

    # Loose semantic check vs the pure-f32 reference.
    mu_f32, std_f32 = reference_forward(x, raw_params)
    assert jnp.allclose(mu, mu_f32, atol=2e-2, rtol=2e-2), "mu mismatch (f32 ref)"
    assert jnp.allclose(std, std_f32, atol=2e-2, rtol=2e-2), "std mismatch (f32 ref)"

    # TODO(synk): CustomNormal distribution object (rsample/log_prob) is framework
    # glue, not kernel compute; the kernel returns its (mu, std) parameters.
    print("KERNEL_OK")
</pallas_src>

<mosaic_0001>
module attributes {stable_mosaic.version = 11 : i64} {
  func.func @gaussian_net_kernel(%arg0: i32, %arg1: memref<96x32xf32, #tpu.memory_space<vmem>>, %arg2: memref<32x128xbf16, #tpu.memory_space<vmem>>, %arg3: memref<1x128xf32, #tpu.memory_space<vmem>>, %arg4: memref<128x128xbf16, #tpu.memory_space<vmem>>, %arg5: memref<1x128xf32, #tpu.memory_space<vmem>>, %arg6: memref<128x128xbf16, #tpu.memory_space<vmem>>, %arg7: memref<1x128xf32, #tpu.memory_space<vmem>>, %arg8: memref<96x128xbf16, #tpu.memory_space<vmem>>) attributes {dimension_semantics = [#tpu.dimension_semantics<parallel>], iteration_bounds = array<i64: 2>, scalar_prefetch = 0 : i64, scratch_operands = 0 : i64, tpu.core_type = #tpu.core_type<tc>, window_params = [{transform_indices = @transform_0, window_bounds = array<i64: 96, 32>}, {pipeline_mode = #tpu.pipeline_mode<synchronous>, transform_indices = @transform_1, window_bounds = array<i64: 32, 128>}, {pipeline_mode = #tpu.pipeline_mode<synchronous>, transform_indices = @transform_2, window_bounds = array<i64: 1, 128>}, {pipeline_mode = #tpu.pipeline_mode<synchronous>, transform_indices = @transform_3, window_bounds = array<i64: 128, 128>}, {pipeline_mode = #tpu.pipeline_mode<synchronous>, transform_indices = @transform_4, window_bounds = array<i64: 1, 128>}, {pipeline_mode = #tpu.pipeline_mode<synchronous>, transform_indices = @transform_5, window_bounds = array<i64: 128, 128>}, {pipeline_mode = #tpu.pipeline_mode<synchronous>, transform_indices = @transform_6, window_bounds = array<i64: 1, 128>}, {transform_indices = @transform_7, window_bounds = array<i64: 96, 128>}]} {
    %c0 = arith.constant 0 : index
    %c0_0 = arith.constant 0 : index
    %0 = vector.load %arg1[%c0, %c0_0] : memref<96x32xf32, #tpu.memory_space<vmem>>, vector<96x32xf32>
    %1 = arith.truncf %0 : vector<96x32xf32> to vector<96x32xbf16>
    %c0_1 = arith.constant 0 : index
    %c0_2 = arith.constant 0 : index
    %2 = vector.load %arg2[%c0_1, %c0_2] : memref<32x128xbf16, #tpu.memory_space<vmem>>, vector<32x128xbf16>
    %cst = arith.constant dense<0.000000e+00> : vector<96x128xf32>
    %3 = tpu.matmul %1, %2, %cst {dimension_numbers = #tpu.dot_dimension_numbers<[1], [0], [0], [1], [0, 0, 1, 1], [], []>} : vector<96x32xbf16>, vector<32x128xbf16>, vector<96x128xf32> -> vector<96x128xf32>
    %c0_3 = arith.constant 0 : index
    %c0_4 = arith.constant 0 : index
    %4 = vector.load %arg3[%c0_3, %c0_4] : memref<1x128xf32, #tpu.memory_space<vmem>>, vector<1x128xf32>
    %5 = vector.broadcast %4 : vector<1x128xf32> to vector<96x128xf32>
    %6 = arith.addf %3, %5 : vector<96x128xf32>
    %cst_5 = arith.constant 0.000000e+00 : f32
    %7 = vector.broadcast %cst_5 : f32 to vector<96x128xf32>
    %8 = arith.maximumf %6, %7 : vector<96x128xf32>
    %9 = arith.truncf %8 : vector<96x128xf32> to vector<96x128xbf16>
    %c0_6 = arith.constant 0 : index
    %c0_7 = arith.constant 0 : index
    %10 = vector.load %arg4[%c0_6, %c0_7] : memref<128x128xbf16, #tpu.memory_space<vmem>>, vector<128x128xbf16>
    %cst_8 = arith.constant dense<0.000000e+00> : vector<96x128xf32>
    %11 = tpu.matmul %9, %10, %cst_8 {dimension_numbers = #tpu.dot_dimension_numbers<[1], [0], [0], [1], [0, 0, 1, 1], [], []>} : vector<96x128xbf16>, vector<128x128xbf16>, vector<96x128xf32> -> vector<96x128xf32>
    %c0_9 = arith.constant 0 : index
    %c0_10 = arith.constant 0 : index
    %12 = vector.load %arg5[%c0_9, %c0_10] : memref<1x128xf32, #tpu.memory_space<vmem>>, vector<1x128xf32>
    %13 = vector.broadcast %12 : vector<1x128xf32> to vector<96x128xf32>
    %14 = arith.addf %11, %13 : vector<96x128xf32>
    %cst_11 = arith.constant 0.000000e+00 : f32
    %15 = vector.broadcast %cst_11 : f32 to vector<96x128xf32>
    %16 = arith.maximumf %14, %15 : vector<96x128xf32>
    %17 = arith.truncf %16 : vector<96x128xf32> to vector<96x128xbf16>
    %c0_12 = arith.constant 0 : index
    %c0_13 = arith.constant 0 : index
    %18 = vector.load %arg6[%c0_12, %c0_13] : memref<128x128xbf16, #tpu.memory_space<vmem>>, vector<128x128xbf16>
    %cst_14 = arith.constant dense<0.000000e+00> : vector<96x128xf32>
    %19 = tpu.matmul %17, %18, %cst_14 {dimension_numbers = #tpu.dot_dimension_numbers<[1], [0], [0], [1], [0, 0, 1, 1], [], []>} : vector<96x128xbf16>, vector<128x128xbf16>, vector<96x128xf32> -> vector<96x128xf32>
    %c0_15 = arith.constant 0 : index
    %c0_16 = arith.constant 0 : index
    %20 = vector.load %arg7[%c0_15, %c0_16] : memref<1x128xf32, #tpu.memory_space<vmem>>, vector<1x128xf32>
    %21 = vector.broadcast %20 : vector<1x128xf32> to vector<96x128xf32>
    %22 = arith.addf %19, %21 : vector<96x128xf32>
    %23 = tpu.iota {dimensions = array<i32: 1>} : vector<96x128xi32>
    %c8_i32 = arith.constant 8 : i32
    %24 = vector.broadcast %c8_i32 : i32 to vector<96x128xi32>
    %25 = arith.cmpi slt, %23, %24 : vector<96x128xi32>
    %cst_17 = arith.constant 2.000000e+00 : f32
    %26 = vector.broadcast %cst_17 : f32 to vector<96x128xf32>
    %27 = arith.mulf %26, %22 : vector<96x128xf32>
    %cst_18 = arith.constant 3.000000e+01 : f32
    %28 = vector.broadcast %cst_18 : f32 to vector<96x128xf32>
    %29 = arith.minimumf %27, %28 : vector<96x128xf32>
    %cst_19 = arith.constant -5.000000e+00 : f32
    %cst_20 = arith.constant 2.000000e+00 : f32
    %30 = vector.broadcast %cst_19 : f32 to vector<96x128xf32>
    %31 = arith.maximumf %30, %22 : vector<96x128xf32>
    %32 = vector.broadcast %cst_20 : f32 to vector<96x128xf32>
    %33 = arith.minimumf %32, %31 : vector<96x128xf32>
    %34 = arith.select %25, %29, %33 : vector<96x128xi1>, vector<96x128xf32>
    %35 = math.exp %34 : vector<96x128xf32>
    %cst_21 = arith.constant 1.000000e+00 : f32
    %36 = vector.broadcast %cst_21 : f32 to vector<96x128xf32>
    %37 = arith.subf %35, %36 : vector<96x128xf32>
    %cst_22 = arith.constant 1.000000e+00 : f32
    %38 = vector.broadcast %cst_22 : f32 to vector<96x128xf32>
    %39 = arith.addf %35, %38 : vector<96x128xf32>
    %40 = tpu.reciprocal %39 {approx = true} : vector<96x128xf32> -> vector<96x128xf32>
    %41 = arith.mulf %37, %40 : vector<96x128xf32>
    %42 = arith.select %25, %41, %35 : vector<96x128xi1>, vector<96x128xf32>
    %43 = arith.truncf %42 : vector<96x128xf32> to vector<96x128xbf16>
    %c0_23 = arith.constant 0 : index
    %c0_24 = arith.constant 0 : index
    %44 = vector.load %arg8[%c0_23, %c0_24] : memref<96x128xbf16, #tpu.memory_space<vmem>>, vector<96x128xbf16>
    tpu.vector_store %arg8[%c0_23, %c0_24], %43 {strides = array<i32>} : memref<96x128xbf16, #tpu.memory_space<vmem>>, vector<96x128xbf16>,
    return
  }
  func.func @transform_0(%arg0: i32) -> (i32, i32) {
    %c0_i32 = arith.constant 0 : i32
    %c0_i32_0 = arith.constant 0 : i32
    return %arg0, %c0_i32 : i32, i32
  }
  func.func @transform_1(%arg0: i32) -> (i32, i32) {
    %c0_i32 = arith.constant 0 : i32
    %c0_i32_0 = arith.constant 0 : i32
    %c0_i32_1 = arith.constant 0 : i32
    return %c0_i32, %c0_i32_0 : i32, i32
  }
  func.func @transform_2(%arg0: i32) -> (i32, i32) {
    %c0_i32 = arith.constant 0 : i32
    %c0_i32_0 = arith.constant 0 : i32
    %c0_i32_1 = arith.constant 0 : i32
    return %c0_i32, %c0_i32_0 : i32, i32
  }
  func.func @transform_3(%arg0: i32) -> (i32, i32) {
    %c0_i32 = arith.constant 0 : i32
    %c0_i32_0 = arith.constant 0 : i32
    %c0_i32_1 = arith.constant 0 : i32
    return %c0_i32, %c0_i32_0 : i32, i32
  }
  func.func @transform_4(%arg0: i32) -> (i32, i32) {
    %c0_i32 = arith.constant 0 : i32
    %c0_i32_0 = arith.constant 0 : i32
    %c0_i32_1 = arith.constant 0 : i32
    return %c0_i32, %c0_i32_0 : i32, i32
  }
  func.func @transform_5(%arg0: i32) -> (i32, i32) {
    %c0_i32 = arith.constant 0 : i32
    %c0_i32_0 = arith.constant 0 : i32
    %c0_i32_1 = arith.constant 0 : i32
    return %c0_i32, %c0_i32_0 : i32, i32
  }
  func.func @transform_6(%arg0: i32) -> (i32, i32) {
    %c0_i32 = arith.constant 0 : i32
    %c0_i32_0 = arith.constant 0 : i32
    %c0_i32_1 = arith.constant 0 : i32
    return %c0_i32, %c0_i32_0 : i32, i32
  }
  func.func @transform_7(%arg0: i32) -> (i32, i32) {
    %c0_i32 = arith.constant 0 : i32
    %c0_i32_0 = arith.constant 0 : i32
    return %arg0, %c0_i32 : i32, i32
  }
}

</mosaic_0001>

<bundles_post_ra>
// kernel: tpu_custom_call.1
= control target key start
LH: loop header
LB: loop body
LE: loop exit
PB: predicated region body
PF: predicated region fallthrough
CT: control target
= control target key end

     0   :  { %12 = vsyncpa [#allocation3], 0  ;;  %s1488_s0 = inlined_call_operand.vmem [shape: f32[192,32], index: 0, kind: input, shape index: {}]   ;;  %s1489_s1 = inlined_call_operand.vmem [shape: bf16[32,128], index: 1, kind: input, shape index: {}]   ;;  %s1490_s2 = inlined_call_operand.vmem [shape: f32[1,128], index: 2, kind: input, shape index: {}]   ;;  %s1491_s3 = inlined_call_operand.vmem [shape: bf16[128,128], index: 3, kind: input, shape index: {}]   ;;  %s1492_s4 = inlined_call_operand.vmem [shape: f32[1,128], index: 4, kind: input, shape index: {}]   ;;  %s1493_s5 = inlined_call_operand.vmem [shape: bf16[128,128], index: 5, kind: input, shape index: {}]   ;;  %s1494_s6 = inlined_call_operand.vmem [shape: f32[1,128], index: 6, kind: input, shape index: {}]   ;;  %s1495_s7 = inlined_call_operand.hbm [shape: bf16[192,128], index: 7, kind: output, shape index: {}]  }
   0x1   :  { %14 = vsyncpa [#allocation3 + $0x1], 0  ;;  %s1243_s24 = smov 0   ;;  %s1245_s25 = smov 0  }
   0x2   :  { %s1247_s26 = smov 0   ;;  %s1249_s27 = smov 0  }
   0x3 LB: > { %s1264_s28 = sadd.s32 4294967295, %s1199_s27   ;;  %s876_s29 = sadd.s32 4294967294, %s1199_s27   ;;  %s1199_s27 = sphi %s1249_s27, %s1501_s27   ;;  %s1195_s26 = sphi %s1247_s26, %s1500_s26   ;;  %s1191_s25 = sphi %s1245_s25, %s1499_s25   ;;  %s1187_s24 = sphi %s1243_s24, %s1498_s24  }
   0x4   : > { %s1268_s30 = sadd.s32 1, %s1199_s27   ;;  %s179_s8 = sadd.s32 1, %s1195_s26 }
   0x5   : > { %s176_s9 = ssub.s32 %s1199_s27, %s1268_s30  ;;  %p189_p0 = scmp.ne.s32.totalorder %s1195_s26, %s1191_s25 }
   0x6   : > { %p177_p1 = scmp.eq.s32.totalorder %s176_s9, 0  ;;  %p190_p2 = scmp.eq.s32.totalorder %s1264_s28, 1 }
   0x7   : > { %p195_p3 = scmp.ne.s32.totalorder %s1191_s25, %s1187_s24  ;;  %p196_p4 = scmp.eq.s32.totalorder %s876_s29, 1 }
   0x8   : > { %s1279_s10 = scalar_select %p177_p1, %s1195_s26, %s179_s8  }
   0x9   : > { %p1281_p5 = por %p190_p2, %p189_p0  ;;  %p1285_p6 = por %p196_p4, %p195_p3 }
   0xa   : > { %p879_p7 = scmp.ge.s32.totalorder %s1199_s27, 1  ;;  %p241_p8 = scmp.lt.s32.totalorder %s1199_s27, 3 }
   0xc   : > { %p242_p9 = pnand %p879_p7, %p241_p8 }
   0xd   : > { %s273_s15 = smul.u32 (!%p242_p9), 12, %s1264_s28  ;;  %s1157_s17 = scalar_lea.hbm (!%p242_p9), %s1495_s7, 96 }
   0xe   : > { %245 = sbr.rel (%p242_p9) target bundleno = 567 (0x237), region = 48 }
   0xf   : > { %p274_p10 = scmp.lt.s32.totalorder (!%p242_p9), %s273_s15, 23  ;;  %s992_s22 = smul.u32 (!%p242_p9), 48, %s1264_s28 }
  0x11   : > { %s810_s29 = scalar_lea.hbm (!%p242_p9), %s1495_s7, %s992_s22 }
  0x12   : > { %s813_s9 = sshll.u32 (!%p242_p9), %s810_s29, 4  ;;  %s814_s9 = int_to_ptr.hbm [resolvable:$true] %s813_s9 }
  0x13   : > { %v975_v0 = vld [vmem:[%s1489_s1 + $0x8] sm:$0xff]  ;;  %v974_v1 = vld [vmem:[%s1489_s1] sm:$0xff]  ;;  %s1503_s15 = smov (!%p274_p10, %s273_s15), 23  ;;  %vm319_vm0 = vcmask 261120   ;;  %v983_v14 = vld [vmem:[%s1491_s3 + $0x38] sm:$0xff]  ;;  %s1151_s13 = sshra.s32 %s814_s9, 4  ;;  %s1152_s13 = int_to_ptr.hbm [resolvable:$true] %s1151_s13 }
  0x14   : > { %344 = vmatpush.bf16.msra.mxu0 %v975_v0  ;;  %s880_s18 = sshll.u32 %s1503_s15, 3  ;;  %463 = vmatpush.bf16.msra.mxu1 %v983_v14  ;;  %v982_v15 = vld [vmem:[%s1491_s3 + $0x30] sm:$0xff]  ;;  %v981_v16 = vld [vmem:[%s1491_s3 + $0x28] sm:$0xff]  ;;  %v980_v19 = vld [vmem:[%s1491_s3 + $0x20] sm:$0xff]  ;;  %s1153_s14 = scalar_lea.hbm %s1152_s13, 48 }
  0x15   : > { %s1301_s21 = scalar_lea.vmem %s1488_s0, %s880_s18  ;;  %1028 = vmatpush.bf16.msra.mxu3 %v983_v14  ;;  %v979_v24 = vld [vmem:[%s1491_s3 + $0x18] sm:$0xff]  ;;  %v978_v25 = vld [vmem:[%s1491_s3 + $0x10] sm:$0xff]  ;;  %v977_v26 = vld [vmem:[%s1491_s3 + $0x8] sm:$0xff]  ;;  %s270_s18 = sand.u32 1, %s1191_s25  }
  0x16   : > { %v281_v2 = vld [vmem:[%s1301_s21] sm:$0xff]  ;;  %v282_v3 = vld [vmem:[%s1301_s21 + $0x8] sm:$0xff]  ;;  %v283_v5 = vld [vmem:[%s1301_s21 + $0x10] sm:$0xff]  ;;  %s1044_s19 = smul.u32 48, %s270_s18  ;;  %s799_s28 = scalar_lea.sflag [#allocation3], %s270_s18 }
  0x17   : > { %v293_v4 = vpack.c.bf16 %v282_v3, %v281_v2  ;;  %v284_v6 = vld [vmem:[%s1301_s21 + $0x18] sm:$0xff]  ;;  %v285_v8 = vld [vmem:[%s1301_s21 + $0x20] sm:$0xff]  ;;  %v286_v9 = vld [vmem:[%s1301_s21 + $0x28] sm:$0xff]  ;;  %p1154_p11 = scmp.ne.s32.totalorder %s1152_s13, %s1153_s14  ;;  %p1158_p0 = scmp.lt.s32.totalorder %s1152_s13, %s1495_s7 }
  0x18   : > { %345 = vmatpush.bf16.msra.mxu0 %v974_v1  ;;  %v294_v7 = vpack.c.bf16 %v284_v6, %v283_v5  ;;  %v295_v10 = vpack.c.bf16 %v286_v9, %v285_v8  ;;  %v287_v11 = vld [vmem:[%s1301_s21 + $0x30] sm:$0xff]  ;;  %v288_v12 = vld [vmem:[%s1301_s21 + $0x38] sm:$0xff]  ;;  %464 = vmatpush.bf16.msra.mxu1 %v982_v15  ;;  %v289_v17 = vld [vmem:[%s1301_s21 + $0x40] sm:$0xff]  ;;  %s1400_s20 = scalar_lea.vmem [#allocation2], %s1044_s19  ;;  %p1159_p1 = scmp.lt.s32.totalorder %s1157_s17, %s1153_s14 }
  0x19   : > { %v296_v13 = vpack.c.bf16 %v288_v12, %v287_v11  ;;  %1029 = vmatpush.bf16.msra.mxu3 %v982_v15  ;;  %v290_v18 = vld [vmem:[%s1301_s21 + $0x48] sm:$0xff]  ;;  %v291_v21 = vld [vmem:[%s1301_s21 + $0x50] sm:$0xff]  ;;  %v292_v22 = vld [vmem:[%s1301_s21 + $0x58] sm:$0xff]  ;;  %s811_s8 = sshll.u32 %s1400_s20, 4  ;;  %p1155_p12 = pnand %p1154_p11, %p1281_p5  ;;  %s812_s8 = int_to_ptr.vmem [resolvable:$true] %s811_s8 }
  0x1a   : > { %v297_v20 = vpack.c.bf16 %v290_v18, %v289_v17  ;;  %v298_v23 = vpack.c.bf16 %v292_v22, %v291_v21  ;;  %v976_v27 = vld [vmem:[%s1491_s3] sm:$0xff]  ;;  %v991_v57 = vld [vmem:[%s1493_s5 + $0x38] sm:$0xff]  ;;  %v990_v59 = vld [vmem:[%s1493_s5 + $0x30] sm:$0xff]  ;;  %p1160_p2 = por %p1159_p1, %p1158_p0 }
  0x1b   : > { %889 = vmatmul.msk.bf16.vlgmr.msra.gmra.mxu0 %vm319_vm0, %v293_v4  ;;  %v1086_v29 = vld [vmem:[%s1490_s2] ss:$0 sm:$0xff]  ;;  %1036 = vmatpush.bf16.msra.mxu2 %v991_v57  ;;  %v989_v60 = vld [vmem:[%s1493_s5 + $0x28] sm:$0xff]  ;;  %v987_v11 = vld [vmem:[%s1493_s5 + $0x18] sm:$0xff]  ;;  %p1156_p13 = pneg %p1155_p12 }
  0x1c   : > { %465 = vmatpush.bf16.msra.mxu1 %v981_v16  ;;  %v988_v0 = vld [vmem:[%s1493_s5 + $0x20] sm:$0xff]  ;;  %v986_v12 = vld [vmem:[%s1493_s5 + $0x10] sm:$0xff] }
  0x1d   : > { %1030 = vmatpush.bf16.msra.mxu3 %v981_v16  ;;  %v984_v14 = vld [vmem:[%s1493_s5] sm:$0xff]  ;;  %p1161_p3 = pnand %p1160_p2, %p1156_p13 }
  0x1e   : > { %v1087_v16 = vld [vmem:[%s1492_s4] ss:$0 sm:$0xff] }
  0x1f   : > { %1037 = vmatpush.bf16.msra.mxu2 %v990_v59 }
  0x20   : > { %466 = vmatpush.bf16.msra.mxu1 %v980_v19 }
  0x21   : > { %1031 = vmatpush.bf16.msra.mxu3 %v980_v19 }
  0x23   : > { %1038 = vmatpush.bf16.msra.mxu2 %v989_v60 }
  0x24   : > { %467 = vmatpush.bf16.msra.mxu1 %v979_v24 }
  0x25   : > { %1032 = vmatpush.bf16.msra.mxu3 %v979_v24 }
  0x27   : > { %1039 = vmatpush.bf16.msra.mxu2 %v988_v0 }
  0x28   : > { %468 = vmatpush.bf16.msra.mxu1 %v978_v25 }
  0x29   : > { %1033 = vmatpush.bf16.msra.mxu3 %v978_v25 }
  0x2b   : > { %890 = vmatmul.msk.bf16.gmra.mxu0 %vm319_vm0, %v294_v7  ;;  %1040 = vmatpush.bf16.msra.mxu2 %v987_v11 }
  0x2c   : > { %469 = vmatpush.bf16.msra.mxu1 %v977_v26 }
  0x2d   : > { %1034 = vmatpush.bf16.msra.mxu3 %v977_v26 }
  0x2f   : > { %1041 = vmatpush.bf16.msra.mxu2 %v986_v12 }
  0x30   : > { %470 = vmatpush.bf16.msra.mxu1 %v976_v27 }
  0x31   : > { %1035 = vmatpush.bf16.msra.mxu3 %v976_v27 }
  0x34   : > { %588 = vmatpush.bf16.msrb.mxu1 %v991_v57 }
  0x38   : > { %589 = vmatpush.bf16.msrb.mxu1 %v990_v59  ;;  %v1378_v59 = vld [vmem:[%s1494_s6] ss:$0 sm:$0xff] }
  0x3b   : > { %891 = vmatmul.msk.bf16.gmra.mxu0 %vm319_vm0, %v295_v10 }
  0x3c   : > { %590 = vmatpush.bf16.msrb.mxu1 %v989_v60 }
  0x40   : > { %591 = vmatpush.bf16.msrb.mxu1 %v988_v0 }
  0x44   : > { %592 = vmatpush.bf16.msrb.mxu1 %v987_v11 }
  0x48   : > { %593 = vmatpush.bf16.msrb.mxu1 %v986_v12 }
  0x4b   : > { %892 = vmatmul.msk.bf16.gmra.mxu0 %vm319_vm0, %v296_v13  ;;  %v985_v13 = vld [vmem:[%s1493_s5 + $0x8] sm:$0xff] }
  0x4c   : > { %594 = vmatpush.bf16.msrb.mxu1 %v985_v13  ;;  %1042 = vmatpush.bf16.msra.mxu2 %v985_v13 }
  0x50   : > { %595 = vmatpush.bf16.msrb.mxu1 %v984_v14  ;;  %1043 = vmatpush.bf16.msra.mxu2 %v984_v14 }
  0x5b   : > { %893 = vmatmul.msk.bf16.gmra.mxu0 %vm319_vm0, %v297_v20 }
  0x6b   : > { %894 = vmatmul.msk.bf16.gmra.mxu0 %vm319_vm0, %v298_v23 }
  0x98   : > { %v347_v28 = vpop.f32.mrf.mxu0 }
  0x99   : > { %v348_v30 = vadd.f32 %v1086_v29, %v347_v28 }
  0x9b   : > { %v377_v33 = vmax.f32 %v348_v30, 0.0 }
  0xa0   : > { %v349_v31 = vpop.f32.mrf.mxu0 }
  0xa1   : > { %v350_v32 = vadd.f32 %v1086_v29, %v349_v31 }
  0xa3   : > { %v378_v34 = vmax.f32 %v350_v32, 0.0 }
  0xa5   : > { %v389_v35 = vpack.c.bf16 %v378_v34, %v377_v33 }
  0xa7   : > { %471 = vmatmul.bf16.vlgmr.msra.gmra.mxu1 %v389_v35 }
  0xa8   : > { %v352_v36 = vpop.f32.mrf.mxu0 }
  0xa9   : > { %v353_v37 = vadd.f32 %v1086_v29, %v352_v36 }
  0xab   : > { %v379_v40 = vmax.f32 %v353_v37, 0.0 }
  0xb0   : > { %v354_v38 = vpop.f32.mrf.mxu0 }
  0xb1   : > { %v355_v39 = vadd.f32 %v1086_v29, %v354_v38 }
  0xb3   : > { %v380_v41 = vmax.f32 %v355_v39, 0.0 }
  0xb5   : > { %v390_v42 = vpack.c.bf16 %v380_v41, %v379_v40 }
  0xb7   : > { %476 = vmatmul.bf16.vlgmr.msra.gmra.mxu3 %v390_v42 }
  0xb8   : > { %v357_v43 = vpop.f32.mrf.mxu0 }
  0xb9   : > { %v358_v44 = vadd.f32 %v1086_v29, %v357_v43 }
  0xbb   : > { %v381_v47 = vmax.f32 %v358_v44, 0.0 }
  0xc0   : > { %v359_v45 = vpop.f32.mrf.mxu0 }
  0xc1   : > { %v360_v46 = vadd.f32 %v1086_v29, %v359_v45 }
  0xc3   : > { %v382_v48 = vmax.f32 %v360_v46, 0.0 }
  0xc5   : > { %v391_v49 = vpack.c.bf16 %v382_v48, %v381_v47 }
  0xc7   : > { %481 = vmatmul.bf16.gmra.mxu3 %v391_v49 }
  0xc8   : > { %v362_v50 = vpop.f32.mrf.mxu0 }
  0xc9   : > { %v363_v51 = vadd.f32 %v1086_v29, %v362_v50 }
  0xcb   : > { %v383_v54 = vmax.f32 %v363_v51, 0.0 }
  0xd0   : > { %v364_v52 = vpop.f32.mrf.mxu0 }
  0xd1   : > { %v365_v53 = vadd.f32 %v1086_v29, %v364_v52 }
  0xd3   : > { %v384_v55 = vmax.f32 %v365_v53, 0.0 }
  0xd5   : > { %v392_v56 = vpack.c.bf16 %v384_v55, %v383_v54 }
  0xd7   : > { %486 = vmatmul.bf16.gmra.mxu3 %v392_v56 }
  0xd8   : > { %v367_v58 = vpop.f32.mrf.mxu0 }
  0xd9   : > { %v368_v61 = vadd.f32 %v1086_v29, %v367_v58  ;;  %v627_v58 = vlaneseq }
  0xdb   : > { %v385_v1 = vmax.f32 %v368_v61, 0.0  ;;  %v1380_v61 = vand.u32 127, %v627_v58 }
  0xdd   : > { %vm629_vm1 = vcmp.lt.s32.totalorder %v1380_v61, 8 }
  0xe0   : > { %v369_v62 = vpop.f32.mrf.mxu0 }
  0xe1   : > { %v370_v63 = vadd.f32 %v1086_v29, %v369_v62 }
  0xe3   : > { %v386_v2 = vmax.f32 %v370_v63, 0.0 }
  0xe5   : > { %v393_v3 = vpack.c.bf16 %v386_v2, %v385_v1 }
  0xe7   : > { %491 = vmatmul.bf16.gmra.mxu3 %v393_v3 }
  0xe8   : > { %v372_v4 = vpop.f32.mrf.mxu0 }
  0xe9   : > { %v373_v5 = vadd.f32 %v1086_v29, %v372_v4 }
  0xeb   : > { %v387_v8 = vmax.f32 %v373_v5, 0.0 }
  0xf0   : > { %v374_v6 = vpop.f32.mrf.mxu0 }
  0xf1   : > { %v375_v7 = vadd.f32 %v1086_v29, %v374_v6 }
  0xf3   : > { %v388_v9 = vmax.f32 %v375_v7, 0.0 }
  0xf5   : > { %v394_v10 = vpack.c.bf16 %v388_v9, %v387_v8 }
  0xf7   : > { %496 = vmatmul.bf16.gmra.mxu3 %v394_v10 }
 0x124   : > { %v472_v15 = vpop.f32.mrf.mxu1 }
 0x125   : > { %v473_v17 = vadd.f32 %v1087_v16, %v472_v15 }
 0x127   : > { %v502_v20 = vmax.f32 %v473_v17, 0.0 }
 0x12c   : > { %v474_v18 = vpop.f32.mrf.mxu1 }
 0x12d   : > { %v475_v19 = vadd.f32 %v1087_v16, %v474_v18 }
 0x12f   : > { %v503_v21 = vmax.f32 %v475_v19, 0.0 }
 0x131   : > { %v514_v22 = vpack.c.bf16 %v503_v21, %v502_v20 }
 0x133   : > { %596 = vmatmul.bf16.vlgmr.msrb.gmra.mxu1 %v514_v22 }
 0x13a   : > { %v477_v23 = vpop.f32.mrf.mxu3 }
 0x13b   : > { %v478_v24 = vadd.f32 %v1087_v16, %v477_v23 }
 0x13d   : > { %v504_v27 = vmax.f32 %v478_v24, 0.0 }
 0x142   : > { %v479_v25 = vpop.f32.mrf.mxu3 }
 0x143   : > { %v480_v26 = vadd.f32 %v1087_v16, %v479_v25 }
 0x145   : > { %v505_v28 = vmax.f32 %v480_v26, 0.0 }
 0x147   : > { %v515_v29 = vpack.c.bf16 %v505_v28, %v504_v27 }
 0x149   : > { %601 = vmatmul.bf16.vlgmr.msra.gmra.mxu2 %v515_v29 }
 0x14a   : > { %v482_v30 = vpop.f32.mrf.mxu3 }
 0x14b   : > { %v483_v31 = vadd.f32 %v1087_v16, %v482_v30 }
 0x14d   : > { %v506_v34 = vmax.f32 %v483_v31, 0.0 }
 0x152   : > { %v484_v32 = vpop.f32.mrf.mxu3 }
 0x153   : > { %v485_v33 = vadd.f32 %v1087_v16, %v484_v32 }
 0x155   : > { %v507_v35 = vmax.f32 %v485_v33, 0.0 }
 0x157   : > { %v516_v36 = vpack.c.bf16 %v507_v35, %v506_v34 }
 0x159   : > { %606 = vmatmul.bf16.gmra.mxu2 %v516_v36 }
 0x15a   : > { %v487_v37 = vpop.f32.mrf.mxu3 }
 0x15b   : > { %v488_v38 = vadd.f32 %v1087_v16, %v487_v37 }
 0x15d   : > { %v508_v41 = vmax.f32 %v488_v38, 0.0 }
 0x162   : > { %v489_v39 = vpop.f32.mrf.mxu3 }
 0x163   : > { %v490_v40 = vadd.f32 %v1087_v16, %v489_v39 }
 0x165   : > { %v509_v42 = vmax.f32 %v490_v40, 0.0 }
 0x167   : > { %v517_v43 = vpack.c.bf16 %v509_v42, %v508_v41 }
 0x169   : > { %611 = vmatmul.bf16.gmra.mxu2 %v517_v43 }
 0x16a   : > { %v492_v44 = vpop.f32.mrf.mxu3 }
 0x16b   : > { %v493_v45 = vadd.f32 %v1087_v16, %v492_v44 }
 0x16d   : > { %v510_v48 = vmax.f32 %v493_v45, 0.0 }
 0x172   : > { %v494_v46 = vpop.f32.mrf.mxu3 }
 0x173   : > { %v495_v47 = vadd.f32 %v1087_v16, %v494_v46 }
 0x175   : > { %v511_v49 = vmax.f32 %v495_v47, 0.0 }
 0x177   : > { %v518_v50 = vpack.c.bf16 %v511_v49, %v510_v48 }
 0x179   : > { %616 = vmatmul.bf16.gmra.mxu2 %v518_v50 }
 0x17a   : > { %v497_v51 = vpop.f32.mrf.mxu3 }
 0x17b   : > { %v498_v52 = vadd.f32 %v1087_v16, %v497_v51 }
 0x17d   : > { %v512_v55 = vmax.f32 %v498_v52, 0.0 }
 0x182   : > { %v499_v53 = vpop.f32.mrf.mxu3 }
 0x183   : > { %v500_v54 = vadd.f32 %v1087_v16, %v499_v53 }
 0x185   : > { %v513_v56 = vmax.f32 %v500_v54, 0.0 }
 0x187   : > { %v519_v57 = vpack.c.bf16 %v513_v56, %v512_v55 }
 0x189   : > { %621 = vmatmul.bf16.gmra.mxu2 %v519_v57 }
 0x1b0   : > { %v597_v60 = vpop.f32.mrf.mxu1 }
 0x1b1   : > { %v598_v62 = vadd.f32 %v1378_v59, %v597_v60 }
 0x1b3   : > { %v630_v63 = vmul.f32 2.0, %v598_v62  ;;  %v654_v0 = vmax.f32 %v598_v62, -5.0 }
 0x1b5   : > { %v642_v1 = vmin.f32 %v630_v63, 30.0  ;;  %v666_v2 = vmin.f32 %v654_v0, 2.0 }
 0x1b7   : > { %v678_v3 = vsel %vm629_vm1, %v642_v1, %v666_v2 }
 0x1b8   : > { %v690_v4 = vmul.f32 1.442695, %v678_v3  ;;  %v599_v5 = vpop.f32.mrf.mxu1 }
 0x1b9   : > { %v600_v6 = vadd.f32 %v1378_v59, %v599_v5 }
 0x1ba   : > { %1089 = vpow2.f32 %v690_v4 }
 0x1bb   : > { %v631_v7 = vmul.f32 2.0, %v600_v6  ;;  %v655_v8 = vmax.f32 %v600_v6, -5.0 }
 0x1bd   : > { %v643_v9 = vmin.f32 %v631_v7, 30.0  ;;  %v667_v10 = vmin.f32 %v655_v8, 2.0 }
 0x1bf   : > { %v679_v11 = vsel %vm629_vm1, %v643_v9, %v667_v10 }
 0x1c0   : > { %v1090_v12 = vpop.eup %1089  ;;  %v692_v13 = vmul.f32 1.442695, %v679_v11 }
 0x1c1   : > { %v726_v14 = vadd.f32 1.0, %v1090_v12  ;;  %v959_v20 = vadd.f32 -1.0, %v1090_v12 }
 0x1c2   : > { %1091 = vpow2.f32 %v692_v13 }
 0x1c3   : > { %1093 = vrcp.f32 %v726_v14 }
 0x1c8   : > { %v1092_v15 = vpop.eup %1091 }
 0x1c9   : > { %v727_v16 = vadd.f32 1.0, %v1092_v15  ;;  %v1094_v18 = vpop.eup %1093  ;;  %v960_v24 = vadd.f32 -1.0, %v1092_v15 }
 0x1ca   : > { %v750_v23 = vmul.f32 %v1094_v18, %v959_v20 }
 0x1cb   : > { %1095 = vrcp.f32 %v727_v16 }
 0x1cc   : > { %v602_v17 = vpop.f32.mrf.mxu2  ;;  %v762_v30 = vsel %vm629_vm1, %v750_v23, %v1090_v12 }
 0x1cd   : > { %v603_v19 = vadd.f32 %v1378_v59, %v602_v17 }
 0x1cf   : > { %v632_v21 = vmul.f32 2.0, %v603_v19  ;;  %v656_v22 = vmax.f32 %v603_v19, -5.0 }
 0x1d1   : > { %v1096_v25 = vpop.eup %1095  ;;  %v644_v26 = vmin.f32 %v632_v21, 30.0  ;;  %v668_v27 = vmin.f32 %v656_v22, 2.0 }
 0x1d2   : > { %v751_v28 = vmul.f32 %v1096_v25, %v960_v24 }
 0x1d3   : > { %v680_v29 = vsel %vm629_vm1, %v644_v26, %v668_v27 }
 0x1d4   : > { %v763_v31 = vsel %vm629_vm1, %v751_v28, %v1092_v15  ;;  %v694_v32 = vmul.f32 1.442695, %v680_v29  ;;  %v604_v33 = vpop.f32.mrf.mxu2 }
 0x1d5   : > { %v996_v34 = vpack.c.bf16 %v763_v31, %v762_v30  ;;  %v605_v35 = vadd.f32 %v1378_v59, %v604_v33 }
 0x1d6   : > { %1097 = vpow2.f32 %v694_v32 }
 0x1d7   : > { %997 = vst [vmem:[%s1400_s20] sm:$0xff] %v996_v34   ;;  %v633_v36 = vmul.f32 2.0, %v605_v35  ;;  %v657_v37 = vmax.f32 %v605_v35, -5.0 }
 0x1d9   : > { %v645_v38 = vmin.f32 %v633_v36, 30.0  ;;  %v669_v39 = vmin.f32 %v657_v37, 2.0 }
 0x1db   : > { %v681_v40 = vsel %vm629_vm1, %v645_v38, %v669_v39 }
 0x1dc   : > { %v1098_v41 = vpop.eup %1097  ;;  %v696_v42 = vmul.f32 1.442695, %v681_v40  ;;  %v607_v43 = vpop.f32.mrf.mxu2 }
 0x1dd   : > { %v608_v44 = vadd.f32 %v1378_v59, %v607_v43  ;;  %v728_v45 = vadd.f32 1.0, %v1098_v41  ;;  %v961_v63 = vadd.f32 -1.0, %v1098_v41 }
 0x1de   : > { %1099 = vpow2.f32 %v696_v42 }
 0x1df   : > { %v634_v46 = vmul.f32 2.0, %v608_v44  ;;  %v658_v47 = vmax.f32 %v608_v44, -5.0  ;;  %1101 = vrcp.f32 %v728_v45 }
 0x1e1   : > { %v646_v48 = vmin.f32 %v634_v46, 30.0  ;;  %v670_v49 = vmin.f32 %v658_v47, 2.0 }
 0x1e3   : > { %v682_v50 = vsel %vm629_vm1, %v646_v48, %v670_v49 }
 0x1e4   : > { %v1100_v51 = vpop.eup %1099  ;;  %v698_v52 = vmul.f32 1.442695, %v682_v50  ;;  %v609_v53 = vpop.f32.mrf.mxu2 }
 0x1e5   : > { %v729_v54 = vadd.f32 1.0, %v1100_v51  ;;  %v610_v55 = vadd.f32 %v1378_v59, %v609_v53  ;;  %v1102_v58 = vpop.eup %1101  ;;  %v962_v3 = vadd.f32 -1.0, %v1100_v51 }
 0x1e6   : > { %1103 = vpow2.f32 %v698_v52  ;;  %v752_v2 = vmul.f32 %v1102_v58, %v961_v63 }
 0x1e7   : > { %1105 = vrcp.f32 %v729_v54  ;;  %v635_v56 = vmul.f32 2.0, %v610_v55  ;;  %v659_v57 = vmax.f32 %v610_v55, -5.0 }
 0x1e8   : > { %v764_v12 = vsel %vm629_vm1, %v752_v2, %v1098_v41 }
 0x1e9   : > { %v647_v60 = vmin.f32 %v635_v56, 30.0  ;;  %v671_v62 = vmin.f32 %v659_v57, 2.0 }
 0x1eb   : > { %v683_v0 = vsel %vm629_vm1, %v647_v60, %v671_v62 }
 0x1ec   : > { %v1104_v1 = vpop.eup %1103  ;;  %v700_v4 = vmul.f32 1.442695, %v683_v0  ;;  %v612_v5 = vpop.f32.mrf.mxu2 }
 0x1ed   : > { %v1106_v6 = vpop.eup %1105  ;;  %v613_v7 = vadd.f32 %v1378_v59, %v612_v5  ;;  %v730_v9 = vadd.f32 1.0, %v1104_v1  ;;  %v963_v28 = vadd.f32 -1.0, %v1104_v1 }
 0x1ee   : > { %v753_v8 = vmul.f32 %v1106_v6, %v962_v3  ;;  %1107 = vpow2.f32 %v700_v4 }
 0x1ef   : > { %v636_v10 = vmul.f32 2.0, %v613_v7  ;;  %v660_v11 = vmax.f32 %v613_v7, -5.0  ;;  %1109 = vrcp.f32 %v730_v9 }
 0x1f0   : > { %v765_v13 = vsel %vm629_vm1, %v753_v8, %v1100_v51 }
 0x1f1   : > { %v1001_v14 = vpack.c.bf16 %v765_v13, %v764_v12  ;;  %v648_v15 = vmin.f32 %v636_v10, 30.0  ;;  %v672_v16 = vmin.f32 %v660_v11, 2.0 }
 0x1f3   : > { %1023 = vst [vmem:[%s1400_s20 + $0x8] sm:$0xff] %v1001_v14   ;;  %v684_v17 = vsel %vm629_vm1, %v648_v15, %v672_v16 }
 0x1f4   : > { %v1108_v18 = vpop.eup %1107  ;;  %v702_v19 = vmul.f32 1.442695, %v684_v17  ;;  %v614_v20 = vpop.f32.mrf.mxu2 }
 0x1f5   : > { %v731_v21 = vadd.f32 1.0, %v1108_v18  ;;  %v615_v22 = vadd.f32 %v1378_v59, %v614_v20  ;;  %v1110_v25 = vpop.eup %1109  ;;  %v964_v32 = vadd.f32 -1.0, %v1108_v18 }
 0x1f6   : > { %1111 = vpow2.f32 %v702_v19  ;;  %v754_v31 = vmul.f32 %v1110_v25, %v963_v28 }
 0x1f7   : > { %1113 = vrcp.f32 %v731_v21  ;;  %v637_v23 = vmul.f32 2.0, %v615_v22  ;;  %v661_v24 = vmax.f32 %v615_v22, -5.0 }
 0x1f8   : > { %v766_v41 = vsel %vm629_vm1, %v754_v31, %v1104_v1 }
 0x1f9   : > { %v649_v26 = vmin.f32 %v637_v23, 30.0  ;;  %v673_v27 = vmin.f32 %v661_v24, 2.0 }
 0x1fb   : > { %v685_v29 = vsel %vm629_vm1, %v649_v26, %v673_v27 }
 0x1fc   : > { %v1112_v30 = vpop.eup %1111  ;;  %v704_v33 = vmul.f32 1.442695, %v685_v29  ;;  %v617_v34 = vpop.f32.mrf.mxu2 }
 0x1fd   : > { %v1114_v35 = vpop.eup %1113  ;;  %v618_v36 = vadd.f32 %v1378_v59, %v617_v34  ;;  %v732_v38 = vadd.f32 1.0, %v1112_v30  ;;  %v965_v57 = vadd.f32 -1.0, %v1112_v30 }
 0x1fe   : > { %v755_v37 = vmul.f32 %v1114_v35, %v964_v32  ;;  %1115 = vpow2.f32 %v704_v33 }
 0x1ff   : > { %v638_v39 = vmul.f32 2.0, %v618_v36  ;;  %v662_v40 = vmax.f32 %v618_v36, -5.0  ;;  %1117 = vrcp.f32 %v732_v38 }
 0x200   : > { %v767_v42 = vsel %vm629_vm1, %v755_v37, %v1108_v18 }
 0x201   : > { %v1006_v43 = vpack.c.bf16 %v767_v42, %v766_v41  ;;  %v650_v44 = vmin.f32 %v638_v39, 30.0  ;;  %v674_v45 = vmin.f32 %v662_v40, 2.0 }
 0x203   : > { %1024 = vst [vmem:[%s1400_s20 + $0x10] sm:$0xff] %v1006_v43   ;;  %v686_v46 = vsel %vm629_vm1, %v650_v44, %v674_v45 }
 0x204   : > { %v1116_v47 = vpop.eup %1115  ;;  %v706_v48 = vmul.f32 1.442695, %v686_v46  ;;  %v619_v49 = vpop.f32.mrf.mxu2 }
 0x205   : > { %v733_v50 = vadd.f32 1.0, %v1116_v47  ;;  %v620_v51 = vadd.f32 %v1378_v59, %v619_v49  ;;  %v1118_v54 = vpop.eup %1117  ;;  %v966_v63 = vadd.f32 -1.0, %v1116_v47 }
 0x206   : > { %1119 = vpow2.f32 %v706_v48  ;;  %v756_v62 = vmul.f32 %v1118_v54, %v965_v57 }
 0x207   : > { %1121 = vrcp.f32 %v733_v50  ;;  %v639_v52 = vmul.f32 2.0, %v620_v51  ;;  %v663_v53 = vmax.f32 %v620_v51, -5.0 }
 0x208   : > { %v768_v8 = vsel %vm629_vm1, %v756_v62, %v1112_v30 }
 0x209   : > { %v651_v55 = vmin.f32 %v639_v52, 30.0  ;;  %v675_v56 = vmin.f32 %v663_v53, 2.0 }
 0x20b   : > { %v687_v58 = vsel %vm629_vm1, %v651_v55, %v675_v56 }
 0x20c   : > { %v1120_v60 = vpop.eup %1119  ;;  %v708_v0 = vmul.f32 1.442695, %v687_v58  ;;  %v622_v1 = vpop.f32.mrf.mxu2 }
 0x20d   : > { %v1122_v2 = vpop.eup %1121  ;;  %v623_v3 = vadd.f32 %v1378_v59, %v622_v1  ;;  %v734_v5 = vadd.f32 1.0, %v1120_v60  ;;  %v967_v24 = vadd.f32 -1.0, %v1120_v60 }
 0x20e   : > { %v757_v4 = vmul.f32 %v1122_v2, %v966_v63  ;;  %1123 = vpow2.f32 %v708_v0 }
 0x20f   : > { %v640_v6 = vmul.f32 2.0, %v623_v3  ;;  %v664_v7 = vmax.f32 %v623_v3, -5.0  ;;  %1125 = vrcp.f32 %v734_v5 }
 0x210   : > { %v769_v9 = vsel %vm629_vm1, %v757_v4, %v1116_v47 }
 0x211   : > { %v1011_v10 = vpack.c.bf16 %v769_v9, %v768_v8  ;;  %v652_v11 = vmin.f32 %v640_v6, 30.0  ;;  %v676_v12 = vmin.f32 %v664_v7, 2.0 }
 0x213   : > { %1025 = vst [vmem:[%s1400_s20 + $0x18] sm:$0xff] %v1011_v10   ;;  %v688_v13 = vsel %vm629_vm1, %v652_v11, %v676_v12 }
 0x214   : > { %v1124_v14 = vpop.eup %1123  ;;  %v710_v15 = vmul.f32 1.442695, %v688_v13  ;;  %v624_v16 = vpop.f32.mrf.mxu2 }
 0x215   : > { %v735_v17 = vadd.f32 1.0, %v1124_v14  ;;  %v625_v18 = vadd.f32 %v1378_v59, %v624_v16  ;;  %v1126_v21 = vpop.eup %1125  ;;  %v968_v28 = vadd.f32 -1.0, %v1124_v14 }
 0x216   : > { %1127 = vpow2.f32 %v710_v15  ;;  %v758_v27 = vmul.f32 %v1126_v21, %v967_v24 }
 0x217   : > { %1129 = vrcp.f32 %v735_v17  ;;  %v641_v19 = vmul.f32 2.0, %v625_v18  ;;  %v665_v20 = vmax.f32 %v625_v18, -5.0 }
 0x218   : > { %v770_v32 = vsel %vm629_vm1, %v758_v27, %v1120_v60 }
 0x219   : > { %v653_v22 = vmin.f32 %v641_v19, 30.0  ;;  %v677_v23 = vmin.f32 %v665_v20, 2.0 }
 0x21b   : > { %v689_v25 = vsel %vm629_vm1, %v653_v22, %v677_v23 }
 0x21c   : > { %v1128_v26 = vpop.eup %1127  ;;  %v712_v29 = vmul.f32 1.442695, %v689_v25 }
 0x21d   : > { %v1130_v30 = vpop.eup %1129  ;;  %v736_v59 = vadd.f32 1.0, %v1128_v26  ;;  %v969_v38 = vadd.f32 -1.0, %v1128_v26 }
 0x21e   : > { %v759_v31 = vmul.f32 %v1130_v30, %v968_v28  ;;  %1131 = vpow2.f32 %v712_v29 }
 0x21f   : > { %1133 = vrcp.f32 %v736_v59 }
 0x220   : > { %v771_v33 = vsel %vm629_vm1, %v759_v31, %v1124_v14 }
 0x221   : > { %v1016_v34 = vpack.c.bf16 %v771_v33, %v770_v32 }
 0x223   : > { %1026 = vst [vmem:[%s1400_s20 + $0x20] sm:$0xff] %v1016_v34  }
 0x224   : > { %v1132_v35 = vpop.eup %1131 }
 0x225   : > { %v737_v36 = vadd.f32 1.0, %v1132_v35  ;;  %v1134_v37 = vpop.eup %1133  ;;  %v970_v40 = vadd.f32 -1.0, %v1132_v35 }
 0x226   : > { %v760_v39 = vmul.f32 %v1134_v37, %v969_v38 }
 0x227   : > { %1135 = vrcp.f32 %v737_v36 }
 0x228   : > { %v772_v43 = vsel %vm629_vm1, %v760_v39, %v1128_v26 }
 0x22d   : > { %v1136_v41 = vpop.eup %1135 }
 0x22e   : > { %v761_v42 = vmul.f32 %v1136_v41, %v970_v40 }
 0x230   : > { %v773_v44 = vsel %vm629_vm1, %v761_v42, %v1132_v35 }
 0x231   : > { %v1021_v45 = vpack.c.bf16 %v773_v44, %v772_v43 }
 0x233   : > { %1027 = vst [vmem:[%s1400_s20 + $0x28] sm:$0xff] %v1021_v45  }
 0x234   : > { %1164 = shalt.err (!%p1161_p3)
}
 0x235   : > { %s1201_s18 = smov 64   ;;  %s1202_s20 = smov 4  }
 0x236   : > { %1045 = dma.vmem_to_hbm [thread:$0]  (%p1281_p5), %s812_s8, 768, %s814_s9, %s799_s28, %s1201_s18, %s1201_s18, %s1202_s20  }
 0x237 PF: > { %p1051_p4 = scmp.ge.s32.totalorder %s1199_s27, 2  ;;  %s828_s21 = sand.u32 1, %s1187_s24  }
 0x238   : > { %s829_s23 = scalar_lea.sflag [#allocation3], %s828_s21 }
 0x239   : > { %p1048_p7 = pnand %p1051_p4, %p1285_p6 }
 0x23b   : > { %p1049_p8 = pneg %p1048_p7 }
 0x23d   : > { %1182 = dma.done.wait (%p1049_p8), %s829_s23, 768  }
 0x23e   : > { %1184 = vsyncadd (%p1049_p8), %s829_s23, 4294966528  ;;  %p17_p9 = scmp.ge.s32.totalorder %s1268_s30, 4   ;;  %s1498_s24 = smov %s1191_s25 }
 0x23f   : > { %s1499_s25 = smov %s1195_s26  ;;  %s1500_s26 = smov %s1279_s10 }
 0x240   : > { %s1501_s27 = smov %s1268_s30  ;;  %19 = sbr.rel (!%p17_p9) target bundleno = 3 (0x3), region = 83 }
 0x245   :  { %835 = vsyncpa [#allocation3], 1 }
 0x246   :  { %837 = vsyncpa [#allocation3 + $0x1], 1 }

</bundles_post_ra>
